<compile_context>
chip_gen: v7x
topology: tpu7x:2x2x1
jax: 0.10.0
libtpu: 0.0.40
codegen_flags: <defaults>
</compile_context>

<pallas_src>
import jax
import jax.numpy as jnp
from jax import lax
from jax.experimental import pallas as pl
from jax.experimental.pallas import tpu as pltpu


# --------------------------------------------------------------------------- #
# Kernel
# --------------------------------------------------------------------------- #
def _meta_learner_kernel(x_ref, w1_ref, b1_ref, w2_ref, b2_ref, w3t_ref,
                         b3t_ref, o_ref):
    """Fused MLP forward for one batch tile (BN already folded into W2'/W3').

    Output is written transposed: o_ref block is (num_agents, batch_tile) so
    the batch axis is the lane dimension (dense stores + dense writeback DMA).
    """
    cd = w1_ref.dtype                                   # matmul operand dtype
    # ---- layer 1: Linear -> ReLU (Dropout = identity; BN1 folded into W2') ----
    x = x_ref[...].astype(cd)                           # in-kernel cast, no extra HBM pass
    h = jnp.dot(x, w1_ref[...], preferred_element_type=jnp.float32)
    h = jnp.maximum(h + b1_ref[...], 0.0)               # (tile, h1) f32

    # ---- layer 2: Linear -> ReLU (BN2 folded into W3') ----
    h = jnp.dot(h.astype(cd), w2_ref[...], preferred_element_type=jnp.float32)
    h = jnp.maximum(h + b2_ref[...], 0.0)               # (tile, h2) f32

    # ---- output head: logits^T = W3'^T @ h^T  (batch stays on the lane axis) ----
    lt = lax.dot_general(w3t_ref[...], h.astype(cd),
                         dimension_numbers=(((1,), (1,)), ((), ())),
                         preferred_element_type=jnp.float32)      # (A, tile)
    lt = lt + b3t_ref[...]                               # (A, 1) broadcast over lanes

    # ---- softmax over the agent axis (axis 0), all in f32, exact reciprocal ----
    m = jnp.max(lt, axis=0, keepdims=True)
    e = jnp.exp(lt - m)
    o_ref[...] = (e * pl.reciprocal(jnp.sum(e, axis=0, keepdims=True))
                  ).astype(o_ref.dtype)


# --------------------------------------------------------------------------- #
# Parameter folding (hoisted out of the per-call path)
# --------------------------------------------------------------------------- #
def fold_meta_learner_params(params, *, operand_dtype=jnp.float32, bn_eps=1e-5):
    """Fold eval-mode BatchNorm into the following Linear; cast weights once.

    BN1(relu1) @ W2 + b2 == relu1 @ (s1[:,None]*W2) + (b2 + t1 @ W2), etc.
    Returns a dict of device arrays reused across forward calls.
    """
    f32 = jnp.float32
    s1 = (params["bn1_gamma"] / jnp.sqrt(params["bn1_var"] + bn_eps)).astype(f32)
    t1 = (params["bn1_beta"] - params["bn1_mean"] * s1).astype(f32)
    s2 = (params["bn2_gamma"] / jnp.sqrt(params["bn2_var"] + bn_eps)).astype(f32)
    t2 = (params["bn2_beta"] - params["bn2_mean"] * s2).astype(f32)

    w2f = params["w2"].astype(f32)
    w3f = params["w3"].astype(f32)
    op = jnp.dtype(operand_dtype)
    return {
        "w1":  params["w1"].astype(f32).astype(op),                        # (d_in, h1)
        "b1":  params["b1"].astype(f32).reshape(1, -1),                    # (1, h1) f32
        "w2":  (s1[:, None] * w2f).astype(op),                             # (h1, h2)
        "b2":  (params["b2"].astype(f32) + t1 @ w2f).reshape(1, -1),       # (1, h2) f32
        "w3t": jnp.transpose((s2[:, None] * w3f).astype(op)),              # (A, h2)
        "b3t": (params["b3"].astype(f32) + t2 @ w3f).reshape(-1, 1),       # (A, 1) f32
    }


# --------------------------------------------------------------------------- #
# Tiling helpers (VMEM-budgeted, per-generation)
# --------------------------------------------------------------------------- #
def _vmem_capacity_bytes():
    try:
        info = pltpu.get_tpu_info()
        cap = getattr(info, "vmem_capacity_bytes", None)
        if cap:
            return int(cap)
    except Exception:
        pass
    return 64 * 1024 * 1024          # conservative fallback (v7x-sized VMEM)


def _row_bytes_estimate(d_in, h1, h2, num_agents, x_itemsize, op_itemsize):
    """Approximate VMEM bytes per batch row (lane padding + double buffering)."""
    lane = lambda n: ((n + 127) // 128) * 128
    x_blk = 2 * lane(d_in) * x_itemsize               # double-buffered x block
    h1_b = lane(h1) * (4 + op_itemsize)               # f32 act + operand-dtype copy
    h2_b = lane(h2) * (4 + op_itemsize)
    out_blk = 2 * max(num_agents, 8) * 4              # double-buffered (A, tile) out
    return x_blk + h1_b + h2_b + out_blk + 256        # + slack for temporaries


def _choose_batch_tile(B, row_bytes, vmem_budget_bytes, *, prefer_steps=4,
                       max_tile=32768):
    """Largest tile within the VMEM budget, keeping >=2 grid steps when legal."""
    max_rows = max(128, vmem_budget_bytes // max(row_bytes, 1))
    if B < 256:
        # Output lane dim must be a multiple of 128 (or the full batch), so
        # batches below 256 run as a single full-array block.
        return B
    target = min(max_rows, max_tile, -(-B // prefer_steps), B)
    target = max(128, (target // 128) * 128)
    for t in range(int(target), 127, -128):           # largest 128-multiple divisor
        if B % t == 0:
            return t
    return int(target)                                # ragged last tile (masked)


# --------------------------------------------------------------------------- #
# Forward wrapper
# --------------------------------------------------------------------------- #
def meta_learner_forward(features, folded, *, batch_tile=None,
                         vmem_limit_bytes=None):
    """features: [B, input_dim] -> agent weights [B, num_agents] (f32)."""
    B, d_in = features.shape
    h1 = folded["w1"].shape[1]
    h2 = folded["w2"].shape[1]
    num_agents = folded["w3t"].shape[0]

    op_itemsize = jnp.dtype(folded["w1"].dtype).itemsize
    x_itemsize = jnp.dtype(features.dtype).itemsize

    vmem_cap = _vmem_capacity_bytes()
    row_bytes = _row_bytes_estimate(d_in, h1, h2, num_agents,
                                    x_itemsize, op_itemsize)
    if batch_tile is None:
        batch_tile = _choose_batch_tile(B, row_bytes, int(0.55 * vmem_cap))
    n_steps = pl.cdiv(B, batch_tile)
    if n_steps > 1 and batch_tile % 128 != 0:
        raise ValueError("multi-step batch_tile must be a multiple of 128 "
                         f"(got {batch_tile})")
    if vmem_limit_bytes is None:
        need = batch_tile * row_bytes + (4 << 20)      # tile + weights + headroom
        vmem_limit_bytes = int(min(0.9 * vmem_cap, max(need, 32 << 20)))

    full = lambda shape: pl.BlockSpec(shape, lambda i: (0, 0))  # whole-array block

    out_t = pl.pallas_call(
        _meta_learner_kernel,
        out_shape=jax.ShapeDtypeStruct((num_agents, B), jnp.float32),
        grid=(n_steps,),
        in_specs=[
            pl.BlockSpec((batch_tile, d_in), lambda i: (i, 0)),   # x tile
            full((d_in, h1)), full((1, h1)),
            full((h1, h2)), full((1, h2)),
            full((num_agents, h2)), full((num_agents, 1)),
        ],
        out_specs=pl.BlockSpec((num_agents, batch_tile), lambda i: (0, i)),
        compiler_params=pltpu.CompilerParams(
            dimension_semantics=("parallel",),
            vmem_limit_bytes=int(vmem_limit_bytes)),
    )(features, folded["w1"], folded["b1"], folded["w2"], folded["b2"],
      folded["w3t"], folded["b3t"])

    # Tiny (A, B) -> (B, A) transpose outside the kernel (A*B*4 bytes).
    return jnp.transpose(out_t)


# --------------------------------------------------------------------------- #
# Synthetic params + pure-JAX reference (eval-mode PyTorch semantics)
# --------------------------------------------------------------------------- #
def _init_params(key, input_dim, num_agents, hidden_dims=(128, 64)):
    ks = jax.random.split(key, 16)
    h1, h2 = hidden_dims
    return {
        "w1": jax.random.normal(ks[0], (input_dim, h1), jnp.float32) * 0.1,
        "b1": jax.random.normal(ks[1], (h1,), jnp.float32) * 0.1,
        "bn1_gamma": 1.0 + 0.1 * jax.random.normal(ks[2], (h1,), jnp.float32),
        "bn1_beta": 0.1 * jax.random.normal(ks[3], (h1,), jnp.float32),
        "bn1_mean": 0.1 * jax.random.normal(ks[4], (h1,), jnp.float32),
        "bn1_var": jnp.abs(jax.random.normal(ks[5], (h1,), jnp.float32)) + 0.5,
        "w2": jax.random.normal(ks[6], (h1, h2), jnp.float32) * 0.1,
        "b2": jax.random.normal(ks[7], (h2,), jnp.float32) * 0.1,
        "bn2_gamma": 1.0 + 0.1 * jax.random.normal(ks[8], (h2,), jnp.float32),
        "bn2_beta": 0.1 * jax.random.normal(ks[9], (h2,), jnp.float32),
        "bn2_mean": 0.1 * jax.random.normal(ks[10], (h2,), jnp.float32),
        "bn2_var": jnp.abs(jax.random.normal(ks[11], (h2,), jnp.float32)) + 0.5,
        "w3": jax.random.normal(ks[12], (h2, num_agents), jnp.float32) * 0.1,
        "b3": jax.random.normal(ks[13], (num_agents,), jnp.float32) * 0.1,
    }


def _reference_forward(features, params):
    eps = 1e-5
    h = features @ params["w1"] + params["b1"]
    h = jnp.maximum(h, 0.0)
    h = (h - params["bn1_mean"]) / jnp.sqrt(params["bn1_var"] + eps)
    h = h * params["bn1_gamma"] + params["bn1_beta"]
    h = h @ params["w2"] + params["b2"]
    h = jnp.maximum(h, 0.0)
    h = (h - params["bn2_mean"]) / jnp.sqrt(params["bn2_var"] + eps)
    h = h * params["bn2_gamma"] + params["bn2_beta"]
    logits = h @ params["w3"] + params["b3"]
    return jax.nn.softmax(logits, axis=-1)


if __name__ == "__main__":
    key = jax.random.PRNGKey(0)
    k_feat, k_par, k_big = jax.random.split(key, 3)

    batch, input_dim, num_agents = 8, 32, 4
    features = jax.random.normal(k_feat, (batch, input_dim), jnp.float32)
    params = _init_params(k_par, input_dim, num_agents)
    ref = _reference_forward(features, params)

    # Fold BN / cast weights ONCE (hoisted out of the per-call path).
    folded_f32 = fold_meta_learner_params(params)

    # 1) f32 path: tight-tolerance check against the pure-JAX reference.
    out = jax.block_until_ready(meta_learner_forward(features, folded_f32))
    assert out.shape == (batch, num_agents)
    assert jnp.allclose(jnp.sum(out, axis=-1), 1.0, atol=1e-5)
    assert jnp.allclose(out, ref, atol=2e-5, rtol=2e-5)

    # 2) bf16-operand path (weights cast once at fold time, x cast in-kernel):
    #    loose tolerance since hidden activations round-trip through bf16.
    folded_bf16 = fold_meta_learner_params(params, operand_dtype=jnp.bfloat16)
    out_bf16 = jax.block_until_ready(meta_learner_forward(features, folded_bf16))
    assert jnp.allclose(jnp.sum(out_bf16, axis=-1), 1.0, atol=2e-3)
    assert jnp.allclose(out_bf16, ref, atol=3e-2)

    # 3) multi-step "parallel" grid (auto tile = 128 -> 4 steps; pipelined x DMA,
    #    batch axis shardable across v7x's two TensorCores).
    big_B = 512
    big_feat = jax.random.normal(k_big, (big_B, input_dim), jnp.float32)
    big_ref = _reference_forward(big_feat, params)
    big_out = jax.block_until_ready(meta_learner_forward(big_feat, folded_f32))
    assert big_out.shape == (big_B, num_agents)
    assert jnp.allclose(big_out, big_ref, atol=2e-5, rtol=2e-5)

    print("KERNEL_OK")
</pallas_src>

<mosaic_0001>
module attributes {stable_mosaic.version = 11 : i64} {
  func.func @_meta_learner_kernel(%arg0: i32, %arg1: memref<8x32xf32, #tpu.memory_space<vmem>>, %arg2: memref<32x128xf32, #tpu.memory_space<vmem>>, %arg3: memref<1x128xf32, #tpu.memory_space<vmem>>, %arg4: memref<128x64xf32, #tpu.memory_space<vmem>>, %arg5: memref<1x64xf32, #tpu.memory_space<vmem>>, %arg6: memref<4x64xf32, #tpu.memory_space<vmem>>, %arg7: memref<4x1xf32, #tpu.memory_space<vmem>>, %arg8: memref<4x8xf32, #tpu.memory_space<vmem>>) attributes {dimension_semantics = [#tpu.dimension_semantics<parallel>], iteration_bounds = array<i64: 1>, scalar_prefetch = 0 : i64, scratch_operands = 0 : i64, tpu.core_type = #tpu.core_type<tc>, window_params = [{transform_indices = @transform_0, window_bounds = array<i64: 8, 32>}, {pipeline_mode = #tpu.pipeline_mode<synchronous>, transform_indices = @transform_1, window_bounds = array<i64: 32, 128>}, {pipeline_mode = #tpu.pipeline_mode<synchronous>, transform_indices = @transform_2, window_bounds = array<i64: 1, 128>}, {pipeline_mode = #tpu.pipeline_mode<synchronous>, transform_indices = @transform_3, window_bounds = array<i64: 128, 64>}, {pipeline_mode = #tpu.pipeline_mode<synchronous>, transform_indices = @transform_4, window_bounds = array<i64: 1, 64>}, {pipeline_mode = #tpu.pipeline_mode<synchronous>, transform_indices = @transform_5, window_bounds = array<i64: 4, 64>}, {pipeline_mode = #tpu.pipeline_mode<synchronous>, transform_indices = @transform_6, window_bounds = array<i64: 4, 1>}, {transform_indices = @transform_7, window_bounds = array<i64: 4, 8>}]} {
    %c0 = arith.constant 0 : index
    %c0_0 = arith.constant 0 : index
    %0 = vector.load %arg1[%c0, %c0_0] : memref<8x32xf32, #tpu.memory_space<vmem>>, vector<8x32xf32>
    %c0_1 = arith.constant 0 : index
    %c0_2 = arith.constant 0 : index
    %1 = vector.load %arg2[%c0_1, %c0_2] : memref<32x128xf32, #tpu.memory_space<vmem>>, vector<32x128xf32>
    %cst = arith.constant dense<0.000000e+00> : vector<8x128xf32>
    %2 = tpu.matmul %0, %1, %cst {dimension_numbers = #tpu.dot_dimension_numbers<[1], [0], [0], [1], [0, 0, 1, 1], [], []>} : vector<8x32xf32>, vector<32x128xf32>, vector<8x128xf32> -> vector<8x128xf32>
    %c0_3 = arith.constant 0 : index
    %c0_4 = arith.constant 0 : index
    %3 = vector.load %arg3[%c0_3, %c0_4] : memref<1x128xf32, #tpu.memory_space<vmem>>, vector<1x128xf32>
    %4 = vector.broadcast %3 : vector<1x128xf32> to vector<8x128xf32>
    %5 = arith.addf %2, %4 : vector<8x128xf32>
    %cst_5 = arith.constant 0.000000e+00 : f32
    %6 = vector.broadcast %cst_5 : f32 to vector<8x128xf32>
    %7 = arith.maximumf %5, %6 : vector<8x128xf32>
    %c0_6 = arith.constant 0 : index
    %c0_7 = arith.constant 0 : index
    %8 = vector.load %arg4[%c0_6, %c0_7] : memref<128x64xf32, #tpu.memory_space<vmem>>, vector<128x64xf32>
    %cst_8 = arith.constant dense<0.000000e+00> : vector<8x64xf32>
    %9 = tpu.matmul %7, %8, %cst_8 {dimension_numbers = #tpu.dot_dimension_numbers<[1], [0], [0], [1], [0, 0, 1, 1], [], []>} : vector<8x128xf32>, vector<128x64xf32>, vector<8x64xf32> -> vector<8x64xf32>
    %c0_9 = arith.constant 0 : index
    %c0_10 = arith.constant 0 : index
    %10 = vector.load %arg5[%c0_9, %c0_10] : memref<1x64xf32, #tpu.memory_space<vmem>>, vector<1x64xf32>
    %11 = vector.broadcast %10 : vector<1x64xf32> to vector<8x64xf32>
    %12 = arith.addf %9, %11 : vector<8x64xf32>
    %cst_11 = arith.constant 0.000000e+00 : f32
    %13 = vector.broadcast %cst_11 : f32 to vector<8x64xf32>
    %14 = arith.maximumf %12, %13 : vector<8x64xf32>
    %c0_12 = arith.constant 0 : index
    %c0_13 = arith.constant 0 : index
    %15 = vector.load %arg6[%c0_12, %c0_13] : memref<4x64xf32, #tpu.memory_space<vmem>>, vector<4x64xf32>
    %cst_14 = arith.constant dense<0.000000e+00> : vector<4x8xf32>
    %16 = tpu.matmul %15, %14, %cst_14 {dimension_numbers = #tpu.dot_dimension_numbers<[1], [1], [0], [0], [0, 0, 1, 0], [], []>} : vector<4x64xf32>, vector<8x64xf32>, vector<4x8xf32> -> vector<4x8xf32>
    %c0_15 = arith.constant 0 : index
    %c0_16 = arith.constant 0 : index
    %17 = vector.load %arg7[%c0_15, %c0_16] : memref<4x1xf32, #tpu.memory_space<vmem>>, vector<4x1xf32>
    %18 = vector.broadcast %17 : vector<4x1xf32> to vector<4x8xf32>
    %19 = arith.addf %16, %18 : vector<4x8xf32>
    %cst_17 = arith.constant dense<0xFF800000> : vector<8xf32>
    %20 = vector.multi_reduction <maximumf>, %19, %cst_17 [0] : vector<4x8xf32> to vector<8xf32>
    %21 = vector.shape_cast %20 : vector<8xf32> to vector<1x8xf32>
    %22 = vector.broadcast %21 : vector<1x8xf32> to vector<4x8xf32>
    %23 = arith.subf %19, %22 : vector<4x8xf32>
    %24 = math.exp %23 : vector<4x8xf32>
    %cst_18 = arith.constant dense<0.000000e+00> : vector<8xf32>
    %25 = vector.multi_reduction <add>, %24, %cst_18 [0] : vector<4x8xf32> to vector<8xf32>
    %26 = vector.shape_cast %25 : vector<8xf32> to vector<1x8xf32>
    %27 = tpu.reciprocal %26 : vector<1x8xf32> -> vector<1x8xf32>
    %28 = vector.broadcast %27 : vector<1x8xf32> to vector<4x8xf32>
    %29 = arith.mulf %24, %28 : vector<4x8xf32>
    %c0_19 = arith.constant 0 : index
    %c0_20 = arith.constant 0 : index
    %30 = vector.load %arg8[%c0_19, %c0_20] : memref<4x8xf32, #tpu.memory_space<vmem>>, vector<4x8xf32>
    tpu.vector_store %arg8[%c0_19, %c0_20], %29 {strides = array<i32>} : memref<4x8xf32, #tpu.memory_space<vmem>>, vector<4x8xf32>,
    return
  }
  func.func @transform_0(%arg0: i32) -> (i32, i32) {
    %c0_i32 = arith.constant 0 : i32
    %c0_i32_0 = arith.constant 0 : i32
    return %arg0, %c0_i32 : i32, i32
  }
  func.func @transform_1(%arg0: i32) -> (i32, i32) {
    %c0_i32 = arith.constant 0 : i32
    %c0_i32_0 = arith.constant 0 : i32
    %c0_i32_1 = arith.constant 0 : i32
    return %c0_i32, %c0_i32_0 : i32, i32
  }
  func.func @transform_2(%arg0: i32) -> (i32, i32) {
    %c0_i32 = arith.constant 0 : i32
    %c0_i32_0 = arith.constant 0 : i32
    %c0_i32_1 = arith.constant 0 : i32
    return %c0_i32, %c0_i32_0 : i32, i32
  }
  func.func @transform_3(%arg0: i32) -> (i32, i32) {
    %c0_i32 = arith.constant 0 : i32
    %c0_i32_0 = arith.constant 0 : i32
    %c0_i32_1 = arith.constant 0 : i32
    return %c0_i32, %c0_i32_0 : i32, i32
  }
  func.func @transform_4(%arg0: i32) -> (i32, i32) {
    %c0_i32 = arith.constant 0 : i32
    %c0_i32_0 = arith.constant 0 : i32
    %c0_i32_1 = arith.constant 0 : i32
    return %c0_i32, %c0_i32_0 : i32, i32
  }
  func.func @transform_5(%arg0: i32) -> (i32, i32) {
    %c0_i32 = arith.constant 0 : i32
    %c0_i32_0 = arith.constant 0 : i32
    %c0_i32_1 = arith.constant 0 : i32
    return %c0_i32, %c0_i32_0 : i32, i32
  }
  func.func @transform_6(%arg0: i32) -> (i32, i32) {
    %c0_i32 = arith.constant 0 : i32
    %c0_i32_0 = arith.constant 0 : i32
    %c0_i32_1 = arith.constant 0 : i32
    return %c0_i32, %c0_i32_0 : i32, i32
  }
  func.func @transform_7(%arg0: i32) -> (i32, i32) {
    %c0_i32 = arith.constant 0 : i32
    %c0_i32_0 = arith.constant 0 : i32
    return %c0_i32, %arg0 : i32, i32
  }
}

</mosaic_0001>

<bundles_post_ra>
// kernel: tpu_custom_call.1
= control target key start
LH: loop header
LB: loop body
LE: loop exit
PB: predicated region body
PF: predicated region fallthrough
CT: control target
= control target key end

     0   :  { %v471_v3 = vmov 0.0|0.0   ;;  %vm472_vm0 = vmmov 0   ;;  %v473_v6 = vmov 0.0   ;;  %s609_s0 = inlined_call_operand.vmem [shape: f32[8,32], index: 0, kind: input, shape index: {}]   ;;  %s610_s1 = inlined_call_operand.vmem [shape: f32[32,128], index: 1, kind: input, shape index: {}]   ;;  %s611_s2 = inlined_call_operand.vmem [shape: f32[1,128], index: 2, kind: input, shape index: {}]   ;;  %s612_s3 = inlined_call_operand.vmem [shape: f32[128,64], index: 3, kind: input, shape index: {}]   ;;  %s613_s4 = inlined_call_operand.vmem [shape: f32[1,64], index: 4, kind: input, shape index: {}]   ;;  %s614_s5 = inlined_call_operand.vmem [shape: f32[4,64], index: 5, kind: input, shape index: {}]   ;;  %s615_s6 = inlined_call_operand.vmem [shape: f32[4,1], index: 6, kind: input, shape index: {}]   ;;  %s616_s7 = inlined_call_operand.hbm [shape: f32[4,8], index: 7, kind: output, shape index: {}]  }
   0x1   :  { %v28_v0 = vld [vmem:[%s610_s1] sm:$0xff]  ;;  %v29_v1 = vld [vmem:[%s610_s1 + $0x8] sm:$0xff]  ;;  %v30_v2 = vld [vmem:[%s610_s1 + $0x10] sm:$0xff]  ;;  %407 = vmatprep.subr.bf16.mxu0 %v471_v3  ;;  %364 = vmatprep.mubr.msk.f32.mxu0 %vm472_vm0, %v473_v6 }
   0x2   :  { %v408_v4 = vpack.c.bf16 %v29_v1, %v28_v0  ;;  %v31_v5 = vld [vmem:[%s610_s1 + $0x18] sm:$0xff]  ;;  %v114_v7 = vld [vmem:[%s612_s3] sm:$0xff]  ;;  %413 = vmatprep.subr.bf16.mxu1 %v471_v3  ;;  %v115_v8 = vld [vmem:[%s612_s3 + $0x8] sm:$0xff]  ;;  %399 = vmatprep.mubr.msk.f32.mxu1 %vm472_vm0, %v473_v6 }
   0x3   :  { %v116_v9 = vld [vmem:[%s612_s3 + $0x10] sm:$0xff]  ;;  %v117_v10 = vld [vmem:[%s612_s3 + $0x18] sm:$0xff]  ;;  %v411_v11 = vpack.c.bf16 %v31_v5, %v30_v2  ;;  %v414_v12 = vpack.c.bf16 %v115_v8, %v114_v7  ;;  %v118_v14 = vld [vmem:[%s612_s3 + $0x20] sm:$0xff] }
   0x4   :  { %409 = vmatpush3.bf16.msra.mxu0 %v408_v4  ;;  %v417_v13 = vpack.c.bf16 %v117_v10, %v116_v9  ;;  %v119_v15 = vld [vmem:[%s612_s3 + $0x28] sm:$0xff] }
   0x5   :  { %410 = vmatprep.subr.bf16.mxu0 %v471_v3  ;;  %415 = vmatpush3.bf16.msra.mxu1 %v414_v12 }
   0x6   :  { %416 = vmatprep.subr.bf16.mxu1 %v471_v3 }
   0x7   :  { %12 = vsyncpa [#allocation3], 0  ;;  %v27_v16 = vld [vmem:[%s609_s0] sm:$0xff]  ;;  %vm39_vm1 = vcmask 261120   ;;  %v420_v17 = vpack.c.bf16 %v119_v15, %v118_v14  ;;  %v120_v18 = vld [vmem:[%s612_s3 + $0x30] sm:$0xff]  ;;  %v474_v39 = vmov 0  }
   0x8   :  { %412 = vmatpush3.bf16.msra.mxu0 %v411_v11  ;;  %v121_v19 = vld [vmem:[%s612_s3 + $0x38] sm:$0xff]  ;;  %v122_v21 = vld [vmem:[%s612_s3 + $0x40] sm:$0xff]  ;;  %v123_v22 = vld [vmem:[%s612_s3 + $0x48] sm:$0xff]  ;;  %442 = vset.pattern.permute.xlu0 %v474_v39  ;;  %vm215_vm2 = vcmask 523264   ;;  %vm292_vm3 = vcmask 60416  }
   0x9   :  { %402 = vmatprep.subr.mxu0 %v473_v6  ;;  %418 = vmatpush3.bf16.msra.mxu1 %v417_v13  ;;  %v423_v20 = vpack.c.bf16 %v121_v19, %v120_v18  ;;  %v426_v23 = vpack.c.bf16 %v123_v22, %v122_v21  ;;  %v124_v24 = vld [vmem:[%s612_s3 + $0x50] sm:$0xff]  ;;  %v125_v25 = vld [vmem:[%s612_s3 + $0x58] sm:$0xff]  ;;  %v126_v27 = vld [vmem:[%s612_s3 + $0x60] sm:$0xff] }
   0xa   :  { %419 = vmatprep.subr.bf16.mxu1 %v471_v3  ;;  %v429_v26 = vpack.c.bf16 %v125_v25, %v124_v24  ;;  %v127_v28 = vld [vmem:[%s612_s3 + $0x68] sm:$0xff]  ;;  %v128_v30 = vld [vmem:[%s612_s3 + $0x70] sm:$0xff]  ;;  %v129_v31 = vld [vmem:[%s612_s3 + $0x78] sm:$0xff] }
   0xb   :  { %365 = vmatmul.mubr.msk.f32.vlgmr.msra.gmra.mrb[0].mxu0 %vm39_vm1, %v27_v16  ;;  %v432_v29 = vpack.c.bf16 %v127_v28, %v126_v27  ;;  %v435_v32 = vpack.c.bf16 %v129_v31, %v128_v30  ;;  %v327_v33 = vld [vmem:[%s611_s2] ss:$0 sm:$0xff] }
   0xc   :  { %404 = vmatprep.mubr.msk.f32.mxu0 %vm472_vm0, %v473_v6  ;;  %v209_v38 = vld [vmem:[%s615_s6] sm:$0xf] }
   0xd   :  { %421 = vmatpush3.bf16.msra.mxu1 %v420_v17  ;;  %212 = vperm.xlu0 %442, %v209_v38   ;;  %v329_v40 = vld [vmem:[%s613_s4] ss:$0 sm:$0xff]  ;;  %s475_s4 = smov [#allocation2]  }
   0xe   :  { %422 = vmatprep.subr.bf16.mxu1 %v471_v3  ;;  %v208_v45 = vld [vmem:[%s614_s5] sm:$0xf]  ;;  %s319_s5 = sshll.u32 %s475_s4, 4  ;;  %s320_s5 = int_to_ptr.vmem [resolvable:$true] %s319_s5 }
   0xf   :  { %s447_s6 = scalar_lea.vmem %s320_s5, 64  ;;  %p452_p1 = scmp.lt.s32.totalorder %s320_s5, %s320_s5 }
  0x10   :  { %p448_p0 = scmp.ne.s32.totalorder %s320_s5, %s447_s6  ;;  %p453_p2 = scmp.lt.s32.totalorder %s447_s6, %s447_s6 }
  0x11   :  { %424 = vmatpush3.bf16.msra.mxu1 %v423_v20 }
  0x12   :  { %425 = vmatprep.subr.bf16.mxu1 %v471_v3  ;;  %p454_p3 = por %p453_p2, %p452_p1 }
  0x14   :  { %p455_p4 = pnand %p454_p3, %p448_p0 }
  0x15   :  { %427 = vmatpush3.bf16.msra.mxu1 %v426_v23 }
  0x16   :  { %428 = vmatprep.subr.bf16.mxu1 %v471_v3 }
  0x19   :  { %430 = vmatpush3.bf16.msra.mxu1 %v429_v26 }
  0x1a   :  { %431 = vmatprep.subr.bf16.mxu1 %v471_v3 }
  0x1d   :  { %433 = vmatpush3.bf16.msra.mxu1 %v432_v29 }
  0x1e   :  { %434 = vmatprep.subr.bf16.mxu1 %v471_v3 }
  0x21   :  { %436 = vmatpush3.bf16.msra.mxu1 %v435_v32 }
  0x8c   :  { %v213_v46 = vpop.permute.xlu0 %212 }
  0xde   :  { %v109_v34 = vpop.f32.mrb[0].mxu0 }
  0xdf   :  { %v110_v35 = vadd.f32 %v327_v33, %v109_v34  ;;  %v366_v36 = vpop.f32.mrb[1].mxu0 }
  0xe1   :  { %v113_v37 = vmax.f32 %v110_v35, 0.0 }
  0xe3   :  { %400 = vmatmul.mubr.f32.vlgmr.msra.gmra.mrb[0].mxu1 %v113_v37 }
 0x1b6   :  { %v203_v41 = vpop.f32.mrb[0].mxu1 }
 0x1b7   :  { %v204_v42 = vadd.f32 %v329_v40, %v203_v41  ;;  %v401_v43 = vpop.f32.mrb[1].mxu1 }
 0x1b9   :  { %v207_v44 = vmax.f32 %v204_v42, 0.0 }
 0x1bb   :  { %403 = vmatpush3.xpose.msk.msra.mxu0 %vm215_vm2, %v207_v44 }
 0x1be   :  { %405 = vmatmul.mubr.msk.f32.vlgmr.msra.gmra.mrb[2].mxu0 %vm215_vm2, %v208_v45 }
 0x291   :  { %v288_v47 = vpop.f32.mrb[2].mxu0 }
 0x292   :  { %v289_v48 = vadd.f32 %v288_v47, %v213_v46  ;;  %v406_v49 = vpop.f32.mrb[3].mxu0 }
 0x294   :  { %v293_v50 = vsel %vm292_vm3, %v289_v48, -inf }
 0x295   :  { %v294_v51 = vrot.slane %v293_v50, 4 }
 0x297   :  { %v295_v52 = vmax.f32 %v293_v50, %v294_v51 }
 0x299   :  { %v296_v53 = vrot.slane %v295_v52, 2 }
 0x29b   :  { %v297_v54 = vmax.f32 %v295_v52, %v296_v53 }
 0x29d   :  { %v298_v55 = vrot.slane %v297_v54, 1 }
 0x29f   :  { %v299_v56 = vmax.f32 %v297_v54, %v298_v55 }
 0x2a1   :  { %v300_v57 = vsub.f32 %v289_v48, %v299_v56 }
 0x2a3   :  { %v301_v58 = vmul.f32 1.442695, %v300_v57 }
 0x2a5   :  { %443 = vpow2.f32 %v301_v58 }
 0x2af   :  { %v444_v59 = vpop.eup %443 }
 0x2b0   :  { %v303_v60 = vsel %vm292_vm3, %v444_v59, 0.0 }
 0x2b1   :  { %v304_v61 = vrot.slane %v303_v60, 4 }
 0x2b3   :  { %v305_v62 = vadd.f32 %v304_v61, %v303_v60 }
 0x2b5   :  { %v306_v63 = vrot.slane %v305_v62, 2 }
 0x2b7   :  { %v307_v0 = vadd.f32 %v306_v63, %v305_v62 }
 0x2b9   :  { %v308_v1 = vrot.slane %v307_v0, 1 }
 0x2bb   :  { %v309_v2 = vadd.f32 %v308_v1, %v307_v0 }
 0x2bd   :  { %445 = vrcp.f32 %v309_v2 }
 0x2c7   :  { %v446_v3 = vpop.eup %445 }
 0x2c8   :  { %v311_v4 = vmul.f32 %v446_v3, %v444_v59 }
 0x2ca   :  { %312 = vst.msk [vmem:[#allocation2] sm:$0xf] %vm292_vm3, %v311_v4 }
 0x2cb   :  { %458 = shalt.err (!%p455_p4)
}
 0x2cc   :  { %s459_s25 = scalar_lea.hbm %s616_s7, 64 }
 0x2cd   :  { %p460_p5 = scmp.ne.s32.totalorder %s616_s7, %s459_s25  ;;  %p463_p6 = scmp.lt.u32.totalorder %s459_s25, %s616_s7 }
 0x2cf   :  { %p465_p7 = pnand %p463_p6, %p460_p5 }
 0x2d1   :  { %468 = shalt.err (!%p465_p7)
}
 0x2d2   :  { %322 = dma.vmem_to_hbm [thread:$0]  %s320_s5, 64, %s616_s7, [#allocation3]  }
 0x2d3   :  { %469 = dma.done.wait [#allocation3], 64  }
 0x2d4   :  { %470 = vsyncadd [#allocation3], 4294967232 }
 0x2d5   :  { %326 = vsyncpa [#allocation3], 1 }

</bundles_post_ra>
